<compile_context>
chip_gen: v6e
topology: v6e:2x2x1
jax: 0.10.0
libtpu: 0.0.40
codegen_flags: <defaults>
</compile_context>

<pallas_src>
import functools

import jax
import jax.numpy as jnp
from jax.experimental import pallas as pl
from jax.experimental.pallas import tpu as pltpu


# ----------------------------------------------------------------------------
# In-kernel math helpers (traced inside the Pallas kernel)
# ----------------------------------------------------------------------------
def _layernorm(x, w, b, eps=1e-5):
    mu = jnp.mean(x, axis=-1, keepdims=True)
    var = jnp.mean((x - mu) ** 2, axis=-1, keepdims=True)
    return (x - mu) * jax.lax.rsqrt(var + eps) * w + b


def _gelu_tanh(x):
    # GELU with tanh approximation, matching nn.GELU('tanh')
    c = 0.7978845608028654  # sqrt(2/pi)
    return 0.5 * x * (1.0 + jnp.tanh(c * (x + 0.044715 * x * x * x)))


# ----------------------------------------------------------------------------
# Kernel: whole encoder stack.  grid = (B, L); the output block (1, S, D) is
# resident across the L axis and carries the running activation.
# ----------------------------------------------------------------------------
def encoder_stack_kernel(x_ref,
                         ln1w_ref, ln1b_ref,
                         wqkv_ref, bqkv_ref,
                         pw_ref, pb_ref,
                         ln2w_ref, ln2b_ref,
                         w1_ref, b1_ref, w2_ref, b2_ref,
                         out_ref, *, num_heads):
    layer = pl.program_id(1)

    # Initialize the per-batch carry with the embedded input on layer 0.
    @pl.when(layer == 0)
    def _():
        out_ref[...] = x_ref[...]

    x = out_ref[0]                                    # (S, D) f32 running activation
    S, D = x.shape
    H = num_heads
    Hd = D // H

    # ---------------- attention sub-block: x = x + proj(attn(LN1(x))) -------
    h = _layernorm(x, ln1w_ref[0], ln1b_ref[0])       # (S, D) f32

    # Fused Q|K|V projection: one wide bf16 matmul, f32 accumulate.
    # (The 1/sqrt(Hd) scale is pre-folded into the Q columns/bias.)
    qkv = jnp.dot(h.astype(jnp.bfloat16), wqkv_ref[0],
                  preferred_element_type=jnp.float32) + bqkv_ref[0]   # (S, 3D)
    q = qkv[:, :D]
    k = qkv[:, D:2 * D]
    v = qkv[:, 2 * D:]

    # Heads as a batch axis (no Python unroll).
    qh = q.reshape(S, H, Hd).swapaxes(0, 1)           # (H, S, Hd)
    kh = k.reshape(S, H, Hd).swapaxes(0, 1)
    vh = v.reshape(S, H, Hd).swapaxes(0, 1)

    s = jnp.einsum('hqd,hkd->hqk',
                   qh.astype(jnp.bfloat16), kh.astype(jnp.bfloat16),
                   preferred_element_type=jnp.float32)            # (H, S, S)
    s = s - jnp.max(s, axis=-1, keepdims=True)
    p = jnp.exp(s)
    denom = jnp.sum(p, axis=-1, keepdims=True)                    # (H, S, 1)
    o = jnp.einsum('hqk,hkd->hqd',
                   p.astype(jnp.bfloat16), vh.astype(jnp.bfloat16),
                   preferred_element_type=jnp.float32)            # (H, S, Hd)
    # Deferred softmax normalization on the small (S, Hd) tensor.
    o = o * pl.reciprocal(denom, approx=False)

    att = o.swapaxes(0, 1).reshape(S, D)              # lane-concat of heads (S, D)
    attn_out = jnp.dot(att.astype(jnp.bfloat16), pw_ref[0],
                       preferred_element_type=jnp.float32) + pb_ref[0]
    x = x + attn_out                                  # residual 1

    # ---------------- MLP sub-block: x = x + MLP(LN2(x)) --------------------
    h2 = _layernorm(x, ln2w_ref[0], ln2b_ref[0])
    m = jnp.dot(h2.astype(jnp.bfloat16), w1_ref[0],
                preferred_element_type=jnp.float32) + b1_ref[0]   # (S, 4D)
    m = _gelu_tanh(m)
    y = jnp.dot(m.astype(jnp.bfloat16), w2_ref[0],
                preferred_element_type=jnp.float32) + b2_ref[0]   # (S, D)

    out_ref[0] = x + y                                # residual 2 -> carry


# ----------------------------------------------------------------------------
# JAX wrapper around pallas_call
# ----------------------------------------------------------------------------
_WEIGHT_ORDER = ('ln1_w', 'ln1_b', 'w_qkv', 'b_qkv', 'pw', 'pb',
                 'ln2_w', 'ln2_b', 'w1', 'b1', 'w2', 'b2')


def encoder_stack(x, packed, *, num_heads):
    B, S, D = x.shape
    L = packed['w_qkv'].shape[0]

    def wspec(per_layer_shape):
        nd = len(per_layer_shape)
        return pl.BlockSpec((1,) + tuple(per_layer_shape),
                            lambda b, l, _nd=nd: (l,) + (0,) * _nd)

    weight_args = [packed[k] for k in _WEIGHT_ORDER]
    weight_specs = [wspec(a.shape[1:]) for a in weight_args]

    return pl.pallas_call(
        functools.partial(encoder_stack_kernel, num_heads=num_heads),
        out_shape=jax.ShapeDtypeStruct((B, S, D), jnp.float32),
        grid_spec=pltpu.PrefetchScalarGridSpec(
            num_scalar_prefetch=0,
            grid=(B, L),
            in_specs=[pl.BlockSpec((1, S, D), lambda b, l: (b, 0, 0))]
                     + weight_specs,
            out_specs=pl.BlockSpec((1, S, D), lambda b, l: (b, 0, 0)),
        ),
        compiler_params=pltpu.CompilerParams(
            dimension_semantics=("parallel", "arbitrary")),
    )(x, *weight_args)


@functools.partial(jax.jit, static_argnames=('num_heads',))
def encoder_forward(packed, tok_table, pos_table, token_ids, *, num_heads):
    # Embedding gather + positional add: plain JAX (XLA fuses gather + add).
    x = jnp.take(tok_table, token_ids, axis=0) \
        + pos_table[: token_ids.shape[1]][None, :, :]             # (B, S, D) f32
    return encoder_stack(x, packed, num_heads=num_heads)


# ----------------------------------------------------------------------------
# Parameter packing: torch-like per-head params -> kernel layout
#   (fused Q|K|V weights, per-layer stacking, bf16 weights, Q scale folded in)
# ----------------------------------------------------------------------------
def pack_for_kernel(params):
    blocks = params['blocks']
    D = params['tok'].shape[1]
    H, _, Hd = blocks[0]['wq'].shape
    scale = 1.0 / float(Hd) ** 0.5

    def stack(fn):
        return jnp.stack([fn(b) for b in blocks], axis=0)

    def qkv_w(b):
        wq = jnp.concatenate([b['wq'][i] for i in range(H)], axis=1) * scale  # (D, D)
        wk = jnp.concatenate([b['wk'][i] for i in range(H)], axis=1)
        wv = jnp.concatenate([b['wv'][i] for i in range(H)], axis=1)
        return jnp.concatenate([wq, wk, wv], axis=1)                          # (D, 3D)

    def qkv_b(b):
        bq = b['bq'].reshape(1, D) * scale
        bk = b['bk'].reshape(1, D)
        bv = b['bv'].reshape(1, D)
        return jnp.concatenate([bq, bk, bv], axis=1)                          # (1, 3D)

    return {
        'ln1_w': stack(lambda b: b['ln1_w']),                       # (L, 1, D) f32
        'ln1_b': stack(lambda b: b['ln1_b']),
        'w_qkv': stack(qkv_w).astype(jnp.bfloat16),                 # (L, D, 3D)
        'b_qkv': stack(qkv_b),                                      # (L, 1, 3D) f32
        'pw': stack(lambda b: b['pw'].reshape(D, D)).astype(jnp.bfloat16),
        'pb': stack(lambda b: b['pb']),
        'ln2_w': stack(lambda b: b['ln2_w']),
        'ln2_b': stack(lambda b: b['ln2_b']),
        'w1': stack(lambda b: b['w1']).astype(jnp.bfloat16),        # (L, D, 4D)
        'b1': stack(lambda b: b['b1']),
        'w2': stack(lambda b: b['w2']).astype(jnp.bfloat16),        # (L, 4D, D)
        'b2': stack(lambda b: b['b2']),
    }


# ----------------------------------------------------------------------------
# Pure-JAX reference (mirrors the PyTorch forward, all f32) for correctness
# ----------------------------------------------------------------------------
def reference_forward(params, token_ids):
    tkn_emb = jnp.take(params['tok'], token_ids, axis=0)
    pos_emb = params['pos'][: token_ids.shape[1]]
    x = tkn_emb + pos_emb[None]
    for blk in params['blocks']:
        h = _layernorm(x, blk['ln1_w'], blk['ln1_b'])
        H, D, Hd = blk['wq'].shape
        heads = []
        for i in range(H):
            q = h @ blk['wq'][i] + blk['bq'][i]
            k = h @ blk['wk'][i] + blk['bk'][i]
            v = h @ blk['wv'][i] + blk['bv'][i]
            s = jnp.einsum('bse,bte->bst', q, k) / jnp.sqrt(float(Hd))
            p = jax.nn.softmax(s, axis=-1)
            heads.append(jnp.einsum('bst,bte->bse', p, v))
        y = jnp.concatenate(heads, axis=-1)
        proj_w = blk['pw'].reshape(D, D)          # rows grouped per head
        x = x + (y @ proj_w + blk['pb'])
        h2 = _layernorm(x, blk['ln2_w'], blk['ln2_b'])
        m = _gelu_tanh(h2 @ blk['w1'] + blk['b1'])
        x = x + (m @ blk['w2'] + blk['b2'])
    return x


# ----------------------------------------------------------------------------
# Deterministic synthetic parameter initialization (torch-like layout)
# ----------------------------------------------------------------------------
def init_params(key, *, vocab, context, D, H, n_blocks):
    Hd = D // H
    k_tok, k_pos, k_blocks = jax.random.split(key, 3)
    params = {
        'tok': 0.02 * jax.random.normal(k_tok, (vocab, D), jnp.float32),
        'pos': 0.02 * jax.random.normal(k_pos, (context, D), jnp.float32),
        'blocks': [],
    }
    bkeys = jax.random.split(k_blocks, n_blocks)
    for b in range(n_blocks):
        ks = jax.random.split(bkeys[b], 12)
        blk = {
            'ln1_w': jnp.ones((1, D), jnp.float32),
            'ln1_b': jnp.zeros((1, D), jnp.float32),
            'wq': 0.02 * jax.random.normal(ks[0], (H, D, Hd), jnp.float32),
            'bq': 0.01 * jax.random.normal(ks[1], (H, Hd), jnp.float32),
            'wk': 0.02 * jax.random.normal(ks[2], (H, D, Hd), jnp.float32),
            'bk': 0.01 * jax.random.normal(ks[3], (H, Hd), jnp.float32),
            'wv': 0.02 * jax.random.normal(ks[4], (H, D, Hd), jnp.float32),
            'bv': 0.01 * jax.random.normal(ks[5], (H, Hd), jnp.float32),
            # output projection stored per-head: (H, Hd, D)
            'pw': 0.02 * jax.random.normal(ks[6], (H, Hd, D), jnp.float32),
            'pb': 0.01 * jax.random.normal(ks[7], (1, D), jnp.float32),
            'ln2_w': jnp.ones((1, D), jnp.float32),
            'ln2_b': jnp.zeros((1, D), jnp.float32),
            'w1': 0.02 * jax.random.normal(ks[8], (D, 4 * D), jnp.float32),
            'b1': 0.01 * jax.random.normal(ks[9], (1, 4 * D), jnp.float32),
            'w2': 0.02 * jax.random.normal(ks[10], (4 * D, D), jnp.float32),
            'b2': 0.01 * jax.random.normal(ks[11], (1, D), jnp.float32),
        }
        params['blocks'].append(blk)
    return params


if __name__ == "__main__":
    # Small config: vocab=64, context=16, batch=2, seq=8, model_dim=32, heads=4, blocks=2
    VOCAB, CONTEXT, B, S, D, H, NBLOCKS = 64, 16, 2, 8, 32, 4, 2

    key = jax.random.PRNGKey(0)
    k_param, k_tok = jax.random.split(key)
    params = init_params(k_param, vocab=VOCAB, context=CONTEXT, D=D, H=H,
                         n_blocks=NBLOCKS)
    token_ids = jax.random.randint(k_tok, (B, S), 0, VOCAB, dtype=jnp.int32)

    packed = pack_for_kernel(params)
    out = encoder_forward(packed, params['tok'], params['pos'], token_ids,
                          num_heads=H)
    out = jax.block_until_ready(out)

    ref = jax.block_until_ready(reference_forward(params, token_ids))
    assert out.shape == (B, S, D)
    max_err = float(jnp.max(jnp.abs(out - ref)))
    # bf16 MXU operands vs the pure-f32 reference -> small numerical deltas.
    assert jnp.allclose(out, ref, atol=3e-3, rtol=3e-2), \
        f"mismatch vs reference (max abs err {max_err})"

    print("KERNEL_OK")
</pallas_src>

<mosaic_0001>
module attributes {stable_mosaic.version = 11 : i64} {
  func.func @encoder_stack_kernel(%arg0: i32, %arg1: i32, %arg2: memref<1x8x32xf32, #tpu.memory_space<vmem>>, %arg3: memref<1x1x32xf32, #tpu.memory_space<vmem>>, %arg4: memref<1x1x32xf32, #tpu.memory_space<vmem>>, %arg5: memref<1x32x96xbf16, #tpu.memory_space<vmem>>, %arg6: memref<1x1x96xf32, #tpu.memory_space<vmem>>, %arg7: memref<1x32x32xbf16, #tpu.memory_space<vmem>>, %arg8: memref<1x1x32xf32, #tpu.memory_space<vmem>>, %arg9: memref<1x1x32xf32, #tpu.memory_space<vmem>>, %arg10: memref<1x1x32xf32, #tpu.memory_space<vmem>>, %arg11: memref<1x32x128xbf16, #tpu.memory_space<vmem>>, %arg12: memref<1x1x128xf32, #tpu.memory_space<vmem>>, %arg13: memref<1x128x32xbf16, #tpu.memory_space<vmem>>, %arg14: memref<1x1x32xf32, #tpu.memory_space<vmem>>, %arg15: memref<1x8x32xf32, #tpu.memory_space<vmem>>) attributes {dimension_semantics = [#tpu.dimension_semantics<parallel>, #tpu.dimension_semantics<arbitrary>], iteration_bounds = array<i64: 2, 2>, scalar_prefetch = 0 : i64, scratch_operands = 0 : i64, tpu.core_type = #tpu.core_type<tc>, window_params = [{transform_indices = @transform_0, window_bounds = array<i64: 1, 8, 32>}, {transform_indices = @transform_1, window_bounds = array<i64: 1, 1, 32>}, {transform_indices = @transform_2, window_bounds = array<i64: 1, 1, 32>}, {transform_indices = @transform_3, window_bounds = array<i64: 1, 32, 96>}, {transform_indices = @transform_4, window_bounds = array<i64: 1, 1, 96>}, {transform_indices = @transform_5, window_bounds = array<i64: 1, 32, 32>}, {transform_indices = @transform_6, window_bounds = array<i64: 1, 1, 32>}, {transform_indices = @transform_7, window_bounds = array<i64: 1, 1, 32>}, {transform_indices = @transform_8, window_bounds = array<i64: 1, 1, 32>}, {transform_indices = @transform_9, window_bounds = array<i64: 1, 32, 128>}, {transform_indices = @transform_10, window_bounds = array<i64: 1, 1, 128>}, {transform_indices = @transform_11, window_bounds = array<i64: 1, 128, 32>}, {transform_indices = @transform_12, window_bounds = array<i64: 1, 1, 32>}, {transform_indices = @transform_13, window_bounds = array<i64: 1, 8, 32>}]} {
    %c0_i32 = arith.constant 0 : i32
    %0 = arith.cmpi eq, %arg1, %c0_i32 : i32
    %1 = arith.extui %0 : i1 to i32
    %c0_i32_0 = arith.constant 0 : i32
    %2 = arith.cmpi ne, %1, %c0_i32_0 : i32
    scf.if %2 {
      %c0_63 = arith.constant 0 : index
      %c0_64 = arith.constant 0 : index
      %c0_65 = arith.constant 0 : index
      %134 = vector.load %arg2[%c0_63, %c0_64, %c0_65] : memref<1x8x32xf32, #tpu.memory_space<vmem>>, vector<1x8x32xf32>
      %c0_66 = arith.constant 0 : index
      %c0_67 = arith.constant 0 : index
      %c0_68 = arith.constant 0 : index
      %135 = vector.load %arg15[%c0_66, %c0_67, %c0_68] : memref<1x8x32xf32, #tpu.memory_space<vmem>>, vector<1x8x32xf32>
      tpu.vector_store %arg15[%c0_66, %c0_67, %c0_68], %134 {strides = array<i32>} : memref<1x8x32xf32, #tpu.memory_space<vmem>>, vector<1x8x32xf32>,
    } else {
    }
    %c0 = arith.constant 0 : index
    %c0_1 = arith.constant 0 : index
    %c0_2 = arith.constant 0 : index
    %3 = vector.load %arg15[%c0, %c0_1, %c0_2] : memref<1x8x32xf32, #tpu.memory_space<vmem>>, vector<1x8x32xf32>
    %4 = vector.shape_cast %3 : vector<1x8x32xf32> to vector<8x32xf32>
    %c0_3 = arith.constant 0 : index
    %c0_4 = arith.constant 0 : index
    %c0_5 = arith.constant 0 : index
    %5 = vector.load %arg3[%c0_3, %c0_4, %c0_5] : memref<1x1x32xf32, #tpu.memory_space<vmem>>, vector<1x1x32xf32>
    %6 = vector.shape_cast %5 : vector<1x1x32xf32> to vector<1x32xf32>
    %c0_6 = arith.constant 0 : index
    %c0_7 = arith.constant 0 : index
    %c0_8 = arith.constant 0 : index
    %7 = vector.load %arg4[%c0_6, %c0_7, %c0_8] : memref<1x1x32xf32, #tpu.memory_space<vmem>>, vector<1x1x32xf32>
    %8 = vector.shape_cast %7 : vector<1x1x32xf32> to vector<1x32xf32>
    %cst = arith.constant dense<0.000000e+00> : vector<8xf32>
    %9 = vector.multi_reduction <add>, %4, %cst [1] : vector<8x32xf32> to vector<8xf32>
    %10 = vector.shape_cast %9 : vector<8xf32> to vector<8x1xf32>
    %cst_9 = arith.constant 3.200000e+01 : f32
    %11 = vector.broadcast %cst_9 : f32 to vector<8x1xf32>
    %12 = arith.divf %10, %11 : vector<8x1xf32>
    %13 = vector.broadcast %12 : vector<8x1xf32> to vector<8x32xf32>
    %14 = arith.subf %4, %13 : vector<8x32xf32>
    %15 = arith.mulf %14, %14 : vector<8x32xf32>
    %cst_10 = arith.constant dense<0.000000e+00> : vector<8xf32>
    %16 = vector.multi_reduction <add>, %15, %cst_10 [1] : vector<8x32xf32> to vector<8xf32>
    %17 = vector.shape_cast %16 : vector<8xf32> to vector<8x1xf32>
    %cst_11 = arith.constant 3.200000e+01 : f32
    %18 = vector.broadcast %cst_11 : f32 to vector<8x1xf32>
    %19 = arith.divf %17, %18 : vector<8x1xf32>
    %20 = vector.broadcast %12 : vector<8x1xf32> to vector<8x32xf32>
    %21 = arith.subf %4, %20 : vector<8x32xf32>
    %cst_12 = arith.constant 9.99999974E-6 : f32
    %22 = vector.broadcast %cst_12 : f32 to vector<8x1xf32>
    %23 = arith.addf %19, %22 : vector<8x1xf32>
    %24 = math.rsqrt %23 : vector<8x1xf32>
    %25 = vector.broadcast %24 : vector<8x1xf32> to vector<8x32xf32>
    %26 = arith.mulf %21, %25 : vector<8x32xf32>
    %27 = vector.broadcast %6 : vector<1x32xf32> to vector<8x32xf32>
    %28 = arith.mulf %26, %27 : vector<8x32xf32>
    %29 = vector.broadcast %8 : vector<1x32xf32> to vector<8x32xf32>
    %30 = arith.addf %28, %29 : vector<8x32xf32>
    %31 = arith.truncf %30 : vector<8x32xf32> to vector<8x32xbf16>
    %c0_13 = arith.constant 0 : index
    %c0_14 = arith.constant 0 : index
    %c0_15 = arith.constant 0 : index
    %32 = vector.load %arg5[%c0_13, %c0_14, %c0_15] : memref<1x32x96xbf16, #tpu.memory_space<vmem>>, vector<1x32x96xbf16>
    %33 = vector.shape_cast %32 : vector<1x32x96xbf16> to vector<32x96xbf16>
    %cst_16 = arith.constant dense<0.000000e+00> : vector<8x96xf32>
    %34 = tpu.matmul %31, %33, %cst_16 {dimension_numbers = #tpu.dot_dimension_numbers<[1], [0], [0], [1], [0, 0, 1, 1], [], []>} : vector<8x32xbf16>, vector<32x96xbf16>, vector<8x96xf32> -> vector<8x96xf32>
    %c0_17 = arith.constant 0 : index
    %c0_18 = arith.constant 0 : index
    %c0_19 = arith.constant 0 : index
    %35 = vector.load %arg6[%c0_17, %c0_18, %c0_19] : memref<1x1x96xf32, #tpu.memory_space<vmem>>, vector<1x1x96xf32>
    %36 = vector.shape_cast %35 : vector<1x1x96xf32> to vector<1x96xf32>
    %37 = vector.broadcast %36 : vector<1x96xf32> to vector<8x96xf32>
    %38 = arith.addf %34, %37 : vector<8x96xf32>
    %39 = vector.extract_strided_slice %38 {offsets = [0, 0], sizes = [8, 32], strides = [1, 1]} : vector<8x96xf32> to vector<8x32xf32>
    %40 = vector.extract_strided_slice %38 {offsets = [0, 32], sizes = [8, 32], strides = [1, 1]} : vector<8x96xf32> to vector<8x32xf32>
    %41 = vector.extract_strided_slice %38 {offsets = [0, 64], sizes = [8, 32], strides = [1, 1]} : vector<8x96xf32> to vector<8x32xf32>
    %42 = vector.shape_cast %39 : vector<8x32xf32> to vector<8x4x8xf32>
    %43 = tpu.transpose %42, [1, 0, 2] : vector<8x4x8xf32> -> vector<4x8x8xf32>
    %44 = vector.shape_cast %40 : vector<8x32xf32> to vector<8x4x8xf32>
    %45 = tpu.transpose %44, [1, 0, 2] : vector<8x4x8xf32> -> vector<4x8x8xf32>
    %46 = vector.shape_cast %41 : vector<8x32xf32> to vector<8x4x8xf32>
    %47 = tpu.transpose %46, [1, 0, 2] : vector<8x4x8xf32> -> vector<4x8x8xf32>
    %48 = arith.truncf %43 : vector<4x8x8xf32> to vector<4x8x8xbf16>
    %49 = arith.truncf %45 : vector<4x8x8xf32> to vector<4x8x8xbf16>
    "tpu.trace_start"() <{level = 10 : i32, message = "hqd,hkd->hqk"}> : () -> ()
    %cst_20 = arith.constant dense<0.000000e+00> : vector<4x8x8xf32>
    %50 = tpu.matmul %48, %49, %cst_20 {dimension_numbers = #tpu.dot_dimension_numbers<[2], [2], [1], [1], [0, 0, 0, 1, 1, 1], [0], [0]>} : vector<4x8x8xbf16>, vector<4x8x8xbf16>, vector<4x8x8xf32> -> vector<4x8x8xf32>
    "tpu.trace_stop"() : () -> ()
    %cst_21 = arith.constant dense<0xFF800000> : vector<4x8xf32>
    %51 = vector.multi_reduction <maximumf>, %50, %cst_21 [2] : vector<4x8x8xf32> to vector<4x8xf32>
    %52 = vector.shape_cast %51 : vector<4x8xf32> to vector<4x8x1xf32>
    %53 = vector.broadcast %52 : vector<4x8x1xf32> to vector<4x8x8xf32>
    %54 = arith.subf %50, %53 : vector<4x8x8xf32>
    %55 = math.exp %54 : vector<4x8x8xf32>
    %cst_22 = arith.constant dense<0.000000e+00> : vector<4x8xf32>
    %56 = vector.multi_reduction <add>, %55, %cst_22 [2] : vector<4x8x8xf32> to vector<4x8xf32>
    %57 = vector.shape_cast %56 : vector<4x8xf32> to vector<4x8x1xf32>
    %58 = arith.truncf %55 : vector<4x8x8xf32> to vector<4x8x8xbf16>
    %59 = arith.truncf %47 : vector<4x8x8xf32> to vector<4x8x8xbf16>
    "tpu.trace_start"() <{level = 10 : i32, message = "hqk,hkd->hqd"}> : () -> ()
    %cst_23 = arith.constant dense<0.000000e+00> : vector<4x8x8xf32>
    %60 = tpu.matmul %58, %59, %cst_23 {dimension_numbers = #tpu.dot_dimension_numbers<[2], [1], [1], [2], [0, 0, 0, 1, 1, 2], [0], [0]>} : vector<4x8x8xbf16>, vector<4x8x8xbf16>, vector<4x8x8xf32> -> vector<4x8x8xf32>
    "tpu.trace_stop"() : () -> ()
    %61 = tpu.reciprocal %57 : vector<4x8x1xf32> -> vector<4x8x1xf32>
    %62 = vector.broadcast %61 : vector<4x8x1xf32> to vector<4x8x8xf32>
    %63 = arith.mulf %60, %62 : vector<4x8x8xf32>
    %64 = tpu.transpose %63, [1, 0, 2] : vector<4x8x8xf32> -> vector<8x4x8xf32>
    %65 = vector.shape_cast %64 : vector<8x4x8xf32> to vector<8x32xf32>
    %66 = arith.truncf %65 : vector<8x32xf32> to vector<8x32xbf16>
    %c0_24 = arith.constant 0 : index
    %c0_25 = arith.constant 0 : index
    %c0_26 = arith.constant 0 : index
    %67 = vector.load %arg7[%c0_24, %c0_25, %c0_26] : memref<1x32x32xbf16, #tpu.memory_space<vmem>>, vector<1x32x32xbf16>
    %68 = vector.shape_cast %67 : vector<1x32x32xbf16> to vector<32x32xbf16>
    %cst_27 = arith.constant dense<0.000000e+00> : vector<8x32xf32>
    %69 = tpu.matmul %66, %68, %cst_27 {dimension_numbers = #tpu.dot_dimension_numbers<[1], [0], [0], [1], [0, 0, 1, 1], [], []>} : vector<8x32xbf16>, vector<32x32xbf16>, vector<8x32xf32> -> vector<8x32xf32>
    %c0_28 = arith.constant 0 : index
    %c0_29 = arith.constant 0 : index
    %c0_30 = arith.constant 0 : index
    %70 = vector.load %arg8[%c0_28, %c0_29, %c0_30] : memref<1x1x32xf32, #tpu.memory_space<vmem>>, vector<1x1x32xf32>
    %71 = vector.shape_cast %70 : vector<1x1x32xf32> to vector<1x32xf32>
    %72 = vector.broadcast %71 : vector<1x32xf32> to vector<8x32xf32>
    %73 = arith.addf %69, %72 : vector<8x32xf32>
    %74 = arith.addf %4, %73 : vector<8x32xf32>
    %c0_31 = arith.constant 0 : index
    %c0_32 = arith.constant 0 : index
    %c0_33 = arith.constant 0 : index
    %75 = vector.load %arg9[%c0_31, %c0_32, %c0_33] : memref<1x1x32xf32, #tpu.memory_space<vmem>>, vector<1x1x32xf32>
    %76 = vector.shape_cast %75 : vector<1x1x32xf32> to vector<1x32xf32>
    %c0_34 = arith.constant 0 : index
    %c0_35 = arith.constant 0 : index
    %c0_36 = arith.constant 0 : index
    %77 = vector.load %arg10[%c0_34, %c0_35, %c0_36] : memref<1x1x32xf32, #tpu.memory_space<vmem>>, vector<1x1x32xf32>
    %78 = vector.shape_cast %77 : vector<1x1x32xf32> to vector<1x32xf32>
    %cst_37 = arith.constant dense<0.000000e+00> : vector<8xf32>
    %79 = vector.multi_reduction <add>, %74, %cst_37 [1] : vector<8x32xf32> to vector<8xf32>
    %80 = vector.shape_cast %79 : vector<8xf32> to vector<8x1xf32>
    %cst_38 = arith.constant 3.200000e+01 : f32
    %81 = vector.broadcast %cst_38 : f32 to vector<8x1xf32>
    %82 = arith.divf %80, %81 : vector<8x1xf32>
    %83 = vector.broadcast %82 : vector<8x1xf32> to vector<8x32xf32>
    %84 = arith.subf %74, %83 : vector<8x32xf32>
    %85 = arith.mulf %84, %84 : vector<8x32xf32>
    %cst_39 = arith.constant dense<0.000000e+00> : vector<8xf32>
    %86 = vector.multi_reduction <add>, %85, %cst_39 [1] : vector<8x32xf32> to vector<8xf32>
    %87 = vector.shape_cast %86 : vector<8xf32> to vector<8x1xf32>
    %cst_40 = arith.constant 3.200000e+01 : f32
    %88 = vector.broadcast %cst_40 : f32 to vector<8x1xf32>
    %89 = arith.divf %87, %88 : vector<8x1xf32>
    %90 = vector.broadcast %82 : vector<8x1xf32> to vector<8x32xf32>
    %91 = arith.subf %74, %90 : vector<8x32xf32>
    %cst_41 = arith.constant 9.99999974E-6 : f32
    %92 = vector.broadcast %cst_41 : f32 to vector<8x1xf32>
    %93 = arith.addf %89, %92 : vector<8x1xf32>
    %94 = math.rsqrt %93 : vector<8x1xf32>
    %95 = vector.broadcast %94 : vector<8x1xf32> to vector<8x32xf32>
    %96 = arith.mulf %91, %95 : vector<8x32xf32>
    %97 = vector.broadcast %76 : vector<1x32xf32> to vector<8x32xf32>
    %98 = arith.mulf %96, %97 : vector<8x32xf32>
    %99 = vector.broadcast %78 : vector<1x32xf32> to vector<8x32xf32>
    %100 = arith.addf %98, %99 : vector<8x32xf32>
    %101 = arith.truncf %100 : vector<8x32xf32> to vector<8x32xbf16>
    %c0_42 = arith.constant 0 : index
    %c0_43 = arith.constant 0 : index
    %c0_44 = arith.constant 0 : index
    %102 = vector.load %arg11[%c0_42, %c0_43, %c0_44] : memref<1x32x128xbf16, #tpu.memory_space<vmem>>, vector<1x32x128xbf16>
    %103 = vector.shape_cast %102 : vector<1x32x128xbf16> to vector<32x128xbf16>
    %cst_45 = arith.constant dense<0.000000e+00> : vector<8x128xf32>
    %104 = tpu.matmul %101, %103, %cst_45 {dimension_numbers = #tpu.dot_dimension_numbers<[1], [0], [0], [1], [0, 0, 1, 1], [], []>} : vector<8x32xbf16>, vector<32x128xbf16>, vector<8x128xf32> -> vector<8x128xf32>
    %c0_46 = arith.constant 0 : index
    %c0_47 = arith.constant 0 : index
    %c0_48 = arith.constant 0 : index
    %105 = vector.load %arg12[%c0_46, %c0_47, %c0_48] : memref<1x1x128xf32, #tpu.memory_space<vmem>>, vector<1x1x128xf32>
    %106 = vector.shape_cast %105 : vector<1x1x128xf32> to vector<1x128xf32>
    %107 = vector.broadcast %106 : vector<1x128xf32> to vector<8x128xf32>
    %108 = arith.addf %104, %107 : vector<8x128xf32>
    %cst_49 = arith.constant 5.000000e-01 : f32
    %109 = vector.broadcast %cst_49 : f32 to vector<8x128xf32>
    %110 = arith.mulf %109, %108 : vector<8x128xf32>
    %cst_50 = arith.constant 4.471500e-02 : f32
    %111 = vector.broadcast %cst_50 : f32 to vector<8x128xf32>
    %112 = arith.mulf %111, %108 : vector<8x128xf32>
    %113 = arith.mulf %112, %108 : vector<8x128xf32>
    %114 = arith.mulf %113, %108 : vector<8x128xf32>
    %115 = arith.addf %108, %114 : vector<8x128xf32>
    %cst_51 = arith.constant 0.797884583 : f32
    %116 = vector.broadcast %cst_51 : f32 to vector<8x128xf32>
    %117 = arith.mulf %116, %115 : vector<8x128xf32>
    %118 = math.tanh %117 : vector<8x128xf32>
    %cst_52 = arith.constant 1.000000e+00 : f32
    %119 = vector.broadcast %cst_52 : f32 to vector<8x128xf32>
    %120 = arith.addf %119, %118 : vector<8x128xf32>
    %121 = arith.mulf %110, %120 : vector<8x128xf32>
    %122 = arith.truncf %121 : vector<8x128xf32> to vector<8x128xbf16>
    %c0_53 = arith.constant 0 : index
    %c0_54 = arith.constant 0 : index
    %c0_55 = arith.constant 0 : index
    %123 = vector.load %arg13[%c0_53, %c0_54, %c0_55] : memref<1x128x32xbf16, #tpu.memory_space<vmem>>, vector<1x128x32xbf16>
    %124 = vector.shape_cast %123 : vector<1x128x32xbf16> to vector<128x32xbf16>
    %cst_56 = arith.constant dense<0.000000e+00> : vector<8x32xf32>
    %125 = tpu.matmul %122, %124, %cst_56 {dimension_numbers = #tpu.dot_dimension_numbers<[1], [0], [0], [1], [0, 0, 1, 1], [], []>} : vector<8x128xbf16>, vector<128x32xbf16>, vector<8x32xf32> -> vector<8x32xf32>
    %c0_57 = arith.constant 0 : index
    %c0_58 = arith.constant 0 : index
    %c0_59 = arith.constant 0 : index
    %126 = vector.load %arg14[%c0_57, %c0_58, %c0_59] : memref<1x1x32xf32, #tpu.memory_space<vmem>>, vector<1x1x32xf32>
    %127 = vector.shape_cast %126 : vector<1x1x32xf32> to vector<1x32xf32>
    %128 = vector.broadcast %127 : vector<1x32xf32> to vector<8x32xf32>
    %129 = arith.addf %125, %128 : vector<8x32xf32>
    %130 = arith.addf %74, %129 : vector<8x32xf32>
    %c0_60 = arith.constant 0 : index
    %c0_61 = arith.constant 0 : index
    %c0_62 = arith.constant 0 : index
    %131 = vector.load %arg15[%c0_60, %c0_61, %c0_62] : memref<1x8x32xf32, #tpu.memory_space<vmem>>, vector<1x8x32xf32>
    %132 = vector.shape_cast %131 : vector<1x8x32xf32> to vector<8x32xf32>
    %133 = vector.shape_cast %130 : vector<8x32xf32> to vector<1x8x32xf32>
    tpu.vector_store %arg15[%c0_60, %c0_61, %c0_62], %133 {strides = array<i32>} : memref<1x8x32xf32, #tpu.memory_space<vmem>>, vector<1x8x32xf32>,
    return
  }
  func.func @transform_0(%arg0: i32, %arg1: i32) -> (i32, i32, i32) {
    %c0_i32 = arith.constant 0 : i32
    %c0_i32_0 = arith.constant 0 : i32
    %c0_i32_1 = arith.constant 0 : i32
    return %arg0, %c0_i32, %c0_i32_0 : i32, i32, i32
  }
  func.func @transform_1(%arg0: i32, %arg1: i32) -> (i32, i32, i32) {
    %c0_i32 = arith.constant 0 : i32
    %c0_i32_0 = arith.constant 0 : i32
    %c0_i32_1 = arith.constant 0 : i32
    return %arg1, %c0_i32, %c0_i32_0 : i32, i32, i32
  }
  func.func @transform_2(%arg0: i32, %arg1: i32) -> (i32, i32, i32) {
    %c0_i32 = arith.constant 0 : i32
    %c0_i32_0 = arith.constant 0 : i32
    %c0_i32_1 = arith.constant 0 : i32
    return %arg1, %c0_i32, %c0_i32_0 : i32, i32, i32
  }
  func.func @transform_3(%arg0: i32, %arg1: i32) -> (i32, i32, i32) {
    %c0_i32 = arith.constant 0 : i32
    %c0_i32_0 = arith.constant 0 : i32
    %c0_i32_1 = arith.constant 0 : i32
    return %arg1, %c0_i32, %c0_i32_0 : i32, i32, i32
  }
  func.func @transform_4(%arg0: i32, %arg1: i32) -> (i32, i32, i32) {
    %c0_i32 = arith.constant 0 : i32
    %c0_i32_0 = arith.constant 0 : i32
    %c0_i32_1 = arith.constant 0 : i32
    return %arg1, %c0_i32, %c0_i32_0 : i32, i32, i32
  }
  func.func @transform_5(%arg0: i32, %arg1: i32) -> (i32, i32, i32) {
    %c0_i32 = arith.constant 0 : i32
    %c0_i32_0 = arith.constant 0 : i32
    %c0_i32_1 = arith.constant 0 : i32
    return %arg1, %c0_i32, %c0_i32_0 : i32, i32, i32
  }
  func.func @transform_6(%arg0: i32, %arg1: i32) -> (i32, i32, i32) {
    %c0_i32 = arith.constant 0 : i32
    %c0_i32_0 = arith.constant 0 : i32
    %c0_i32_1 = arith.constant 0 : i32
    return %arg1, %c0_i32, %c0_i32_0 : i32, i32, i32
  }
  func.func @transform_7(%arg0: i32, %arg1: i32) -> (i32, i32, i32) {
    %c0_i32 = arith.constant 0 : i32
    %c0_i32_0 = arith.constant 0 : i32
    %c0_i32_1 = arith.constant 0 : i32
    return %arg1, %c0_i32, %c0_i32_0 : i32, i32, i32
  }
  func.func @transform_8(%arg0: i32, %arg1: i32) -> (i32, i32, i32) {
    %c0_i32 = arith.constant 0 : i32
    %c0_i32_0 = arith.constant 0 : i32
    %c0_i32_1 = arith.constant 0 : i32
    return %arg1, %c0_i32, %c0_i32_0 : i32, i32, i32
  }
  func.func @transform_9(%arg0: i32, %arg1: i32) -> (i32, i32, i32) {
    %c0_i32 = arith.constant 0 : i32
    %c0_i32_0 = arith.constant 0 : i32
    %c0_i32_1 = arith.constant 0 : i32
    return %arg1, %c0_i32, %c0_i32_0 : i32, i32, i32
  }
  func.func @transform_10(%arg0: i32, %arg1: i32) -> (i32, i32, i32) {
    %c0_i32 = arith.constant 0 : i32
    %c0_i32_0 = arith.constant 0 : i32
    %c0_i32_1 = arith.constant 0 : i32
    return %arg1, %c0_i32, %c0_i32_0 : i32, i32, i32
  }
  func.func @transform_11(%arg0: i32, %arg1: i32) -> (i32, i32, i32) {
    %c0_i32 = arith.constant 0 : i32
    %c0_i32_0 = arith.constant 0 : i32
    %c0_i32_1 = arith.constant 0 : i32
    return %arg1, %c0_i32, %c0_i32_0 : i32, i32, i32
  }
  func.func @transform_12(%arg0: i32, %arg1: i32) -> (i32, i32, i32) {
    %c0_i32 = arith.constant 0 : i32
    %c0_i32_0 = arith.constant 0 : i32
    %c0_i32_1 = arith.constant 0 : i32
    return %arg1, %c0_i32, %c0_i32_0 : i32, i32, i32
  }
  func.func @transform_13(%arg0: i32, %arg1: i32) -> (i32, i32, i32) {
    %c0_i32 = arith.constant 0 : i32
    %c0_i32_0 = arith.constant 0 : i32
    %c0_i32_1 = arith.constant 0 : i32
    return %arg0, %c0_i32, %c0_i32_0 : i32, i32, i32
  }
}

</mosaic_0001>

<bundles_post_ra>
// kernel: encoder_forward.1
= control target key start
LH: loop header
LB: loop body
LE: loop exit
PB: predicated region body
PF: predicated region fallthrough
CT: control target
= control target key end

     0   :  { %s3191_s0 = inlined_call_operand.vmem [shape: f32[2,8,32], index: 0, kind: input, shape index: {}]   ;;  %s3192_s1 = inlined_call_operand.vmem [shape: f32[2,1,32], index: 1, kind: input, shape index: {}]   ;;  %s3193_s2 = inlined_call_operand.vmem [shape: f32[2,1,32], index: 2, kind: input, shape index: {}]   ;;  %s3194_s3 = inlined_call_operand.vmem [shape: bf16[2,32,96], index: 3, kind: input, shape index: {}]   ;;  %s3195_s4 = inlined_call_operand.vmem [shape: f32[2,1,96], index: 4, kind: input, shape index: {}]   ;;  %s3196_s5 = inlined_call_operand.vmem [shape: bf16[2,32,32], index: 5, kind: input, shape index: {}]   ;;  %s3197_s6 = inlined_call_operand.vmem [shape: f32[2,1,32], index: 6, kind: input, shape index: {}]   ;;  %s3198_s7 = inlined_call_operand.vmem [shape: f32[2,1,32], index: 7, kind: input, shape index: {}]   ;;  %s3199_s8 = inlined_call_operand.vmem [shape: f32[2,1,32], index: 8, kind: input, shape index: {}]   ;;  %s3200_s9 = inlined_call_operand.vmem [shape: bf16[2,32,128], index: 9, kind: input, shape index: {}]   ;;  %s3201_s10 = inlined_call_operand.vmem [shape: f32[2,1,128], index: 10, kind: input, shape index: {}]   ;;  %s3202_s11 = inlined_call_operand.vmem [shape: bf16[2,128,32], index: 11, kind: input, shape index: {}]   ;;  %s3203_s12 = inlined_call_operand.vmem [shape: f32[2,1,32], index: 12, kind: input, shape index: {}]   ;;  %s3204_s13 = inlined_call_operand.hbm [shape: f32[2,8,32], index: 13, kind: output, shape index: {}]  }
   0x1   :  { %3220 = sst [smem:[#allocation18_spill]] %s3191_s0 }
   0x2   :  { %3221 = sst [smem:[#allocation19_spill]] %s3194_s3 }
   0x3   :  { %3222 = sst [smem:[#allocation20_spill]] %s3196_s5 }
   0x4   :  { %3223 = sst [smem:[#allocation21_spill]] %s3198_s7 }
   0x5   :  { %3224 = sst [smem:[#allocation22_spill]] %s3202_s11 }
   0x6   :  { %3225 = sst [smem:[#allocation23_spill]] %s3204_s13 }
   0x7   :  { %18 = vsyncpa [#allocation3], 0 }
   0x8   :  { %20 = vsyncpa [#allocation3 + $0x1], 0  ;;  %s2750_s25 = smov 0   ;;  %s2752_s26 = smov 0  }
   0x9   :  { %s2754_s27 = smov 0   ;;  %s2756_s28 = smov 0  }
   0xa   :  { %s2758_s29 = smov 0   ;;  %s2760_s30 = smov 0  }
   0xb   :  { %s2762_s14 = smov 0   ;;  %s2764_s15 = smov 0  }
   0xc LB: > { %3226 = sst [smem:[#allocation5_spill]] %s2637_s25  ;;  %s2263_s16 = sadd.s32 4294967295, %s2665_s15   ;;  %s2665_s15 = sphi %s2764_s15, %s26_s15   ;;  %s2661_s14 = sphi %s2762_s14, %s3267_s14   ;;  %s2657_s30 = sphi %s2760_s30, %s3266_s30   ;;  %s2653_s29 = sphi %s2758_s29, %s3265_s29   ;;  %s2649_s28 = sphi %s2756_s28, %s3264_s28   ;;  %s2645_s27 = sphi %s2754_s27, %s3263_s27   ;;  %s2641_s26 = sphi %s2752_s26, %s3262_s26   ;;  %s2637_s25 = sphi %s2750_s25, %s3261_s25  }
   0xd   : > { %3227 = sst [smem:[#allocation6_spill]] %s2641_s26  ;;  %s2264_s17 = sadd.s32 4294967294, %s2665_s15  }
   0xe   : > { %3228 = sst [smem:[#allocation7_spill]] %s2645_s27  ;;  %s35_s18 = sadd.s32 1, %s2657_s30 }
   0xf   : > { %3229 = sst [smem:[#allocation8_spill]] %s2649_s28  ;;  %p36_p0 = scmp.ge.s32.totalorder %s35_s18, 2 }
  0x10   : > { %3230 = sst [smem:[#allocation9_spill]] %s2653_s29  ;;  %s38_s19 = sadd.s32 1, %s2661_s14 }
  0x11   : > { %3231 = sst [smem:[#allocation10_spill]] %s2657_s30  ;;  %p393_p1 = scmp.ne.s32.totalorder %s2645_s27, %s2641_s26 }
  0x12   : > { %3232 = sst [smem:[#allocation11_spill]] %s2661_s14  ;;  %p394_p2 = scmp.eq.s32.totalorder %s2263_s16, 3 }
  0x13   : > { %3233 = sst [smem:[#allocation12_spill]] %s2665_s15  ;;  %s3269_s18 = smov (%p36_p0, %s35_s18), 0 }
  0x14   : > { %3234 = sst [smem:[#allocation13_spill]] %s3269_s18  ;;  %s3271_s19 = smov (!%p36_p0, %s38_s19), %s2661_s14 }
  0x15   : > { %p2799_p3 = por %p394_p2, %p393_p1  ;;  %p399_p4 = scmp.ne.s32.totalorder %s2641_s26, %s2637_s25 }
  0x16   : > { %p40_p5 = scmp.ge.s32.totalorder %s3271_s19, 2  ;;  %p400_p6 = scmp.eq.s32.totalorder %s2264_s17, 3 }
  0x17   : > { %s3235_s20 = scalar_select %p2799_p3, 1, 0 }
  0x18   : > { %p2267_p7 = scmp.ge.s32.totalorder %s2665_s15, 1  ;;  %p505_p8 = scmp.lt.s32.totalorder %s2665_s15, 5 }
  0x19   : > { %3236 = sst [smem:[#allocation14_spill]] %s3235_s20  ;;  %s3273_s19 = smov (%p40_p5, %s3271_s19), 0 }
  0x1a   : > { %3237 = sst [smem:[#allocation15_spill]] %s3273_s19  ;;  %p2809_p9 = por %p400_p6, %p399_p4 }
  0x1b   : > { %p506_p10 = pnand %p2267_p7, %p505_p8  ;;  %s380_s22 = ssub.s32 %s2661_s14, %s3273_s19 }
  0x1c   : > { %s3238_s21 = scalar_select %p2809_p9, 1, 0 }
  0x1d   : > { %s383_s23 = sadd.s32 1, %s2645_s27  ;;  %p381_p11 = scmp.eq.s32.totalorder %s380_s22, 0 }
  0x1e   : > { %3239 = sst [smem:[#allocation16_spill]] %s3238_s21  ;;  %509 = sbr.rel (%p506_p10) target bundleno = 2526 (0x9de), region = 72 }
  0x1f   : > { %s2817_s24 = scalar_select %p381_p11, %s2645_s27, %s383_s23  }
  0x20   : > { %s3208_s16 = sand.u32 (!%p506_p10), 1, %s2641_s26   ;;  %p592_p12 = scmp.lt.s32.totalorder (!%p506_p10), %s2653_s29, 1 }
  0x21   : > { %3240 = sst [smem:[#allocation17_spill]] %s2817_s24  ;;  %s2268_s17 = sshll.u32 (!%p506_p10), %s3208_s16, 3 }
  0x22   : > { %p596_p13 = scmp.lt.s32.totalorder (!%p506_p10), %s2649_s28, 1  ;;  %s3241_s0 = sld [smem:[#allocation18_spill]] (!%p506_p10) }
  0x23   : > { %s593_s18 = scalar_select %p592_p12, %s2653_s29, 1 }
  0x24   : > { %s2826_s30 = scalar_select %p596_p13, %s2649_s28, 1 }
  0x25   : > { %s2269_s22 = sshll.u32 %s593_s18, 3  ;;  %s3242_s3 = sld [smem:[#allocation19_spill]] }
  0x26   : > { %s2324_s13 = sshll.u32 %s2826_s30, 4  ;;  %s3243_s5 = sld [smem:[#allocation20_spill]] }
  0x27   : > { %s2869_s18 = scalar_lea.vmem %s3200_s9, %s2324_s13  ;;  %s631_s11 = scalar_lea.vmem %s3201_s10, %s2826_s30 }
  0x28   : > { %s595_s14 = scalar_lea.vmem %s3241_s0, %s2269_s22  ;;  %s623_s0 = scalar_lea.vmem %s3199_s8, %s2826_s30 }
  0x29   : > { %s639_s25 = scalar_lea.vmem %s3203_s12, %s2826_s30  ;;  %s3245_s27 = sld [smem:[#allocation22_spill]] }
  0x2a   : > { %s2885_s26 = scalar_lea.vmem [#allocation2], %s2268_s17  ;;  %s3246_s20 = sld [smem:[#allocation8_spill]] }
  0x2b   : > { %s2843_s29 = scalar_lea.vmem %s3242_s3, %s2324_s13 }
  0x2c   : > { %s2852_s23 = scalar_lea.vmem %s3243_s5, %s2324_s13  ;;  %s2327_s5 = sshll.u32 %s2826_s30, 6 }
  0x2f   : > { %s2883_s7 = scalar_lea.vmem %s3245_s27, %s2327_s5 }
  0x30   : > { %p2278_p0 = scmp.ne.s32.totalorder %s3246_s20, 0 }
  0x32   : > { %644 = sbr.rel (%p2278_p0) target bundleno = 57 (0x39), region = 76 }
  0x37   : > { %v645_v0 = vld [vmem:[%s595_s14] sm:$0xff]  ;;  %vm646_vm0 = vcmask 261120  }
  0x38   : > { %647 = vst.msk [vmem:[%s2885_s26] sm:$0xff] %vm646_vm0, %v645_v0 }
  0x39 PF: > { %vm651_vm1 = vcmask 261120   ;;  %v2537_v8 = vld [vmem:[%s2843_s29 + $0x8] sm:$0xff]   ;;  %v2667_v9 = vmov 0.0   ;;  %vm2668_vm2 = vmmov 0   ;;  %v2538_v10 = vld [vmem:[%s2843_s29] sm:$0xff]   ;;  %s3247_s13 = scalar_lea.vmem %s3192_s1, %s2826_s30  ;;  %s3248_s14 = scalar_lea.vmem %s3193_s2, %s2826_s30  ;;  %v762_v32 = vlaneseq }
  0x3a   : > { %2362 = vmatprep.subr.bf16.mxu0 %v2667_v9  ;;  %2366 = vmatprep.mubr.msk.bf16.mxu0 %vm2668_vm2, %v2667_v9  ;;  %v2279_v15 = vld [vmem:[%s3247_s13] ss:$0 sm:$0xff]  ;;  %s3249_s19 = scalar_lea.vmem %s3195_s4, %s2826_s30  ;;  %s2669_s22 = smov 104   ;;  %v2674_v30 = vmov 1983009808   ;;  %vm1197_vm3 = vcmask 64512  }
  0x3b   : > { %2363 = vmatpush3.bf16.msra.mxu0 %v2537_v8  ;;  %2382 = vmatprep.subr.bf16.mxu1 %v2667_v9  ;;  %v2280_v17 = vld [vmem:[%s3248_s14] ss:$0 sm:$0xff]  ;;  %s2670_s24 = smov 120   ;;  %s2671_s16 = smov 112   ;;  %v760_v31 = vunpack.c.l.s4 %v2674_v30  ;;  %v763_v34 = vshrl.u32 %v762_v32, 7  ;;  %vm1429_vm4 = vcmask 1043456  }
  0x3c   : > { %2364 = vmatprep.subr.bf16.mxu0 %v2667_v9  ;;  %2384 = vmatprep.mubr.msk.bf16.mxu1 %vm2668_vm2, %v2667_v9  ;;  %v2281_v21 = vld [vmem:[%s3249_s19] ss:$0 sm:$0xff]  ;;  %s2672_s15 = smov 96   ;;  %s2673_s21 = smov 64   ;;  %v2675_v36 = vmov 1934713408  }
  0x3d   : > { %v761_v33 = vunpack.c.0.s8 %v760_v31  ;;  %v792_v37 = vunpack.c.l.s4 %v2675_v36  ;;  %s2677_s20 = smov 8   ;;  %s2678_s3 = smov 24   ;;  %vm1768_vm5 = vcmask 130048   ;;  %vm1770_vm6 = vcmask 195584  }
  0x3e   : > { %s3250_s27 = scalar_lea.vmem %s3197_s6, %s2826_s30  ;;  %s3251_s17 = sld [smem:[#allocation21_spill]] }
  0x3f   : > { %v2890_v1 = vld [vmem:[%s2885_s26] sm:$0xff]  ;;  %2365 = vmatpush3.bf16.msra.mxu0 %v2538_v10  ;;  %v2936_v40 = vsub.s32 %v761_v33, %v763_v34  ;;  %v793_v44 = vunpack.c.0.s8 %v792_v37  ;;  %s3256_s5 = sld [smem:[#allocation23_spill]]  ;;  %s2679_s29 = smov [#allocation2]  }
  0x40   : > { %v652_v2 = vsel %vm651_vm1, %v2890_v1, 0.0  ;;  %2370 = vmatprep.subr.bf16.mxu0 %v2667_v9  ;;  %s2577_s14 = sshll.u32 %s2679_s29, 4  ;;  %s2578_s14 = int_to_ptr.vmem [resolvable:$false] %s2577_s14 }
  0x41   : > { %653 = vadd.xlane.f32.xlu0 %v652_v2  ;;  %v2946_v50 = vsub.s32 %v793_v44, %v763_v34 }
  0x44   : > { %s3252_s28 = scalar_lea.vmem %s3251_s17, %s2826_s30  ;;  %s2579_s17 = scalar_lea.vmem %s2578_s14, 256 }
  0xca   : > { %v654_v3 = vpop.xlane.xlu0 %653 }
  0xcb   : > { %v656_v4 = vmul.f32 0.03125, %v654_v3 }
  0xcd   : > { %v657_v5 = vsub.f32 %v2890_v1, %v656_v4 }
  0xcf   : > { %v658_v6 = vmul.f32 %v657_v5, %v657_v5 }
  0xd1   : > { %v659_v7 = vsel %vm651_vm1, %v658_v6, 0.0 }
  0xd2   : > { %660 = vadd.xlane.f32.xlu0 %v659_v7 }
 0x15b   : > { %v661_v11 = vpop.xlane.xlu0 %660 }
 0x15c   : > { %v662_v12 = vmul.f32 0.03125, %v661_v11 }
 0x15e   : > { %v663_v13 = vadd.f32 1e-05, %v662_v12 }
 0x160   : > { %2551 = vrsqrt.f32 %v663_v13 }
 0x16d   : > { %v2552_v14 = vpop.eup %2551 }
 0x16e   : > { %v665_v16 = vmul.f32 %v2552_v14, %v657_v5 }
 0x170   : > { %v672_v18 = vmul.f32 %v2279_v15, %v665_v16 }
 0x172   : > { %v679_v19 = vadd.f32 %v2280_v17, %v672_v18 }
 0x174   : > { %v680_v20 = vpack.c.bf16 %v679_v19, %v679_v19 }
 0x176   : > { %2367 = vmatmul.mubr.msk.bf16.vlgmr.msra.gmra.mxu0 %vm651_vm1, %v680_v20 }
 0x177   : > { %2372 = vmatprep.mubr.msk.bf16.mxu0 %vm2668_vm2, %v2667_v9 }
 0x236   : > { %v741_v22 = vpop.f32.mrf.mxu0 }
 0x237   : > { %v742_v23 = vadd.f32 %v2281_v21, %v741_v22 }
 0x238   : > { %v2368_v24 = vpop.f32.mrf.mxu0 }
 0x239   : > { %754 = vrot.lane.b32.xlu0 %v742_v23, %s2669_s22  ;;  %748 = vrot.lane.b32.xlu1 %v742_v23, %s2670_s24  ;;  %s3253_s24 = sld [smem:[#allocation9_spill]] }
 0x23a   : > { %v744_v25 = vpop.f32.mrf.mxu0 }
 0x23c   : > { %v2369_v26 = vpop.f32.mrf.mxu0 }
 0x23d   : > { %751 = vrot.lane.b32.xlu1 %v742_v23, %s2671_s16 }
 0x241   : > { %893 = vrot.lane.b32.xlu1 %v742_v23, %s2672_s15 }
 0x2ab   : > { %v2924_v27 = vpop.permute.xlu1 %748  ;;  %v2930_v29 = vpop.permute.xlu0 %754 }
 0x2ac   : > { %895 = vrot.lane.b32.xlu1 %v2924_v27, %s2672_s15  ;;  %v773_v41 = vcombine.low %v2924_v27, %v2930_v29  ;;  %v774_v42 = vcombine.high %v2924_v27, %v2930_v29 }
 0x2ae   : > { %v781_v47 = vrot.slane %v773_v41, %v2936_v40  ;;  %v788_v48 = vrot.slane %v774_v42, %v2936_v40 }
 0x2af   : > { %v2927_v28 = vpop.permute.xlu1 %751 }
 0x2b0   : > { %897 = vrot.lane.b32.xlu1 %v2927_v28, %s2672_s15  ;;  %v757_v38 = vcombine.low %v742_v23, %v2927_v28  ;;  %v758_v39 = vcombine.high %v742_v23, %v2927_v28 }
 0x2b2   : > { %v765_v45 = vrot.slane %v757_v38, %v2936_v40  ;;  %v772_v46 = vrot.slane %v758_v39, %v2936_v40 }
 0x2b3   : > { %v894_v35 = vpop.permute.xlu1 %893 }
 0x2b4   : > { %899 = vrot.lane.b32.xlu1 %v2930_v29, %s2672_s15  ;;  %v789_v51 = vcombine.low %v765_v45, %v781_v47  ;;  %v790_v52 = vcombine.high %v765_v45, %v781_v47  ;;  %v805_v53 = vcombine.low %v772_v46, %v788_v48  ;;  %v806_v54 = vcombine.high %v772_v46, %v788_v48 }
 0x2b6   : > { %v797_v60 = vrot.slane %v789_v51, %v2946_v50  ;;  %v804_v61 = vrot.slane %v790_v52, %v2946_v50  ;;  %v813_v62 = vrot.slane %v805_v53, %v2946_v50  ;;  %v820_v63 = vrot.slane %v806_v54, %v2946_v50 }
 0x2b8   : > { %1041 = vrot.lane.b32.xlu1 %v742_v23, %s2673_s21  ;;  %v825_v10 = vcombine.low %v797_v60, %v804_v61  ;;  %v2285_v11 = vcombine.high %v797_v60, %v804_v61  ;;  %v841_v12 = vcombine.low %v813_v62, %v820_v63  ;;  %v2286_v13 = vcombine.high %v813_v62, %v820_v63 }
 0x2ba   : > { %v832_v22 = vrot.slane %v825_v10, %v2936_v40  ;;  %v840_v23 = vrot.slane %v2285_v11, %v2936_v40  ;;  %v848_v24 = vrot.slane %v841_v12, %v2936_v40  ;;  %v856_v25 = vrot.slane %v2286_v13, %v2936_v40 }
 0x2bc   : > { %v857_v37 = vcombine.low %v832_v22, %v840_v23  ;;  %v873_v38 = vcombine.low %v848_v24, %v856_v25  ;;  %v858_v39 = vcombine.high %v832_v22, %v840_v23  ;;  %v874_v41 = vcombine.high %v848_v24, %v856_v25 }
 0x2be   : > { %v865_v48 = vrot.slane %v857_v37, %v2946_v50  ;;  %v872_v53 = vrot.slane %v858_v39, %v2946_v50  ;;  %v888_v54 = vrot.slane %v874_v41, %v2946_v50 }
 0x31e   : > { %v896_v43 = vpop.permute.xlu1 %895 }
 0x322   : > { %v898_v49 = vpop.permute.xlu1 %897 }
 0x323   : > { %v905_v55 = vcombine.low %v894_v35, %v898_v49  ;;  %v906_v56 = vcombine.high %v894_v35, %v898_v49  ;;  %v881_v49 = vrot.slane %v873_v38, %v2946_v50 }
 0x325   : > { %v913_v0 = vrot.slane %v905_v55, %v2936_v40  ;;  %v920_v2 = vrot.slane %v906_v56, %v2936_v40 }
 0x326   : > { %v900_v57 = vpop.permute.xlu1 %899 }
 0x327   : > { %v921_v58 = vcombine.low %v896_v43, %v900_v57  ;;  %v922_v59 = vcombine.high %v896_v43, %v900_v57 }
 0x329   : > { %v929_v3 = vrot.slane %v921_v58, %v2936_v40  ;;  %v936_v4 = vrot.slane %v922_v59, %v2936_v40  ;;  %v889_v58 = vcombine.low %v865_v48, %v881_v49  ;;  %v891_v59 = vcombine.low %v872_v53, %v888_v54 }
 0x32b   : > { %v937_v5 = vcombine.low %v913_v0, %v929_v3  ;;  %v938_v6 = vcombine.high %v913_v0, %v929_v3  ;;  %v953_v7 = vcombine.low %v920_v2, %v936_v4  ;;  %v954_v8 = vcombine.high %v920_v2, %v936_v4 }
 0x32c   : > { %v1189_v61 = vpack.c.bf16 %v889_v58, %v889_v58  ;;  %v1191_v62 = vpack.c.bf16 %v891_v59, %v891_v59  ;;  %v890_v2 = vcombine.high %v865_v48, %v881_v49 }
 0x32d   : > { %v945_v14 = vrot.slane %v937_v5, %v2946_v50  ;;  %v952_v15 = vrot.slane %v938_v6, %v2946_v50  ;;  %v961_v16 = vrot.slane %v953_v7, %v2946_v50  ;;  %v968_v17 = vrot.slane %v954_v8, %v2946_v50 }
 0x32e   : > { %v1190_v4 = vpack.c.bf16 %v890_v2, %v890_v2  ;;  %v892_v6 = vcombine.high %v872_v53, %v888_v54 }
 0x32f   : > { %v973_v18 = vcombine.low %v945_v14, %v952_v15  ;;  %v2287_v19 = vcombine.high %v945_v14, %v952_v15  ;;  %v989_v20 = vcombine.low %v961_v16, %v968_v17  ;;  %v2288_v21 = vcombine.high %v961_v16, %v968_v17 }
 0x330   : > { %v1192_v7 = vpack.c.bf16 %v892_v6, %v892_v6 }
 0x331   : > { %v980_v26 = vrot.slane %v973_v18, %v2936_v40  ;;  %v988_v30 = vrot.slane %v2287_v19, %v2936_v40  ;;  %v996_v31 = vrot.slane %v989_v20, %v2936_v40  ;;  %v1004_v32 = vrot.slane %v2288_v21, %v2936_v40 }
 0x333   : > { %v1005_v33 = vcombine.low %v980_v26, %v988_v30  ;;  %v1021_v34 = vcombine.low %v996_v31, %v1004_v32  ;;  %v1006_v35 = vcombine.high %v980_v26, %v988_v30  ;;  %v1022_v36 = vcombine.high %v996_v31, %v1004_v32  ;;  %v1042_v32 = vpop.permute.xlu1 %1041 }
 0x335   : > { %v1013_v42 = vrot.slane %v1005_v33, %v2946_v50  ;;  %v1029_v43 = vrot.slane %v1021_v34, %v2946_v50  ;;  %v1020_v44 = vrot.slane %v1006_v35, %v2946_v50  ;;  %v1036_v45 = vrot.slane %v1022_v36, %v2946_v50 }
 0x337   : > { %v1037_v46 = vcombine.low %v1013_v42, %v1029_v43  ;;  %v1039_v47 = vcombine.low %v1020_v44, %v1036_v45  ;;  %v1038_v57 = vcombine.high %v1013_v42, %v1029_v43  ;;  %v1040_v0 = vcombine.high %v1020_v44, %v1036_v45 }
 0x339   : > { %v1193_v51 = vpack.c.bf16 %v1037_v46, %v1037_v46  ;;  %v1195_v52 = vpack.c.bf16 %v1039_v47, %v1039_v47  ;;  %v1194_v60 = vpack.c.bf16 %v1038_v57, %v1038_v57  ;;  %v1196_v3 = vpack.c.bf16 %v1040_v0, %v1040_v0 }
 0x33b   : > { %v1202_v55 = vsel %vm1197_vm3, %v1193_v51, 0  ;;  %v1294_v56 = vsel %vm1197_vm3, %v1195_v52, 0  ;;  %v1248_v63 = vsel %vm1197_vm3, %v1194_v60, 0  ;;  %v1340_v5 = vsel %vm1197_vm3, %v1196_v3, 0 }
 0x33c   : > { %2371 = vmatpush3.bf16.xpose.msra.mxu0 %v1202_v55  ;;  %2383 = vmatpush3.bf16.xpose.msra.mxu1 %v1294_v56 }
 0x33d   : > { %2376 = vmatprep.subr.bf16.mxu0 %v2667_v9  ;;  %2394 = vmatprep.subr.bf16.mxu1 %v2667_v9 }
 0x343   : > { %2373 = vmatmul.mubr.msk.bf16.vlgmr.msra.gmra.mxu0 %vm1197_vm3, %v1189_v61  ;;  %2385 = vmatmul.mubr.msk.bf16.vlgmr.msra.gmra.mxu1 %vm1197_vm3, %v1191_v62 }
 0x344   : > { %2377 = vmatpush3.bf16.xpose.msra.mxu0 %v1248_v63  ;;  %2378 = vmatprep.mubr.msk.bf16.mxu0 %vm2668_vm2, %v2667_v9 }
 0x345   : > { %2388 = vmatprep.subr.bf16.mxu0 %v2667_v9  ;;  %2396 = vmatprep.mubr.msk.bf16.mxu1 %vm2668_vm2, %v2667_v9 }
 0x34b   : > { %2379 = vmatmul.mubr.msk.bf16.vlgmr.msra.gmra.mxu0 %vm1197_vm3, %v1190_v4 }
 0x34c   : > { %2389 = vmatpush3.bf16.xpose.msra.mxu0 %v1340_v5  ;;  %2390 = vmatprep.mubr.msk.bf16.mxu0 %vm2668_vm2, %v2667_v9 }
 0x34d   : > { %2400 = vmatprep.subr.bf16.mxu0 %v2667_v9 }
 0x353   : > { %2391 = vmatmul.mubr.msk.bf16.vlgmr.msra.gmra.mxu0 %vm1197_vm3, %v1192_v7 }
 0x354   : > { %2402 = vmatprep.mubr.msk.bf16.mxu0 %vm2668_vm2, %v2667_v9 }
 0x403   : > { %v1238_v8 = vpop.f32.mrf.mxu0  ;;  %v2996_v10 = vpop.f32.mrf.mxu1 }
 0x404   : > { %v1382_v11 = vsel %vm1197_vm3, %v1238_v8, -inf  ;;  %v1388_v31 = vsel %vm1197_vm3, %v2996_v10, -inf }
 0x405   : > { %v2386_v12 = vpop.f32.mrf.mxu1  ;;  %1383 = vmax.xlane.f32.xlu1 %v1382_v11  ;;  %v2374_v13 = vpop.f32.mrf.mxu0 }
 0x407   : > { %v1241_v14 = vpop.f32.mrf.mxu0  ;;  %v1333_v15 = vpop.f32.mrf.mxu1 }
 0x409   : > { %v2375_v16 = vpop.f32.mrf.mxu0  ;;  %v2387_v17 = vpop.f32.mrf.mxu1 }
 0x40b   : > { %v1284_v18 = vpop.f32.mrf.mxu0 }
 0x40c   : > { %v1385_v19 = vsel %vm1197_vm3, %v1284_v18, -inf }
 0x40d   : > { %1386 = vmax.xlane.f32.xlu0 %v1385_v19  ;;  %v2380_v20 = vpop.f32.mrf.mxu0 }
 0x40f   : > { %v1287_v21 = vpop.f32.mrf.mxu0 }
 0x411   : > { %v2381_v22 = vpop.f32.mrf.mxu0 }
 0x413   : > { %v3000_v23 = vpop.f32.mrf.mxu0 }
 0x414   : > { %v1391_v30 = vsel %vm1197_vm3, %v3000_v23, -inf }
 0x415   : > { %v2392_v24 = vpop.f32.mrf.mxu0 }
 0x416   : > { %1045 = vrot.lane.b32.xlu1 %v2927_v28, %s2673_s21 }
 0x417   : > { %v1379_v25 = vpop.f32.mrf.mxu0 }
 0x419   : > { %v2393_v26 = vpop.f32.mrf.mxu0 }
 0x41a   : > { %1047 = vrot.lane.b32.xlu1 %v2930_v29, %s2673_s21 }
 0x423   : > { %1043 = vrot.lane.b32.xlu0 %v2924_v27, %s2673_s21  ;;  %s2321_s21 = sshll.u32 %s3253_s24, 7 }
 0x424   : > { %s3135_s13 = scalar_lea.hbm %s3256_s5, %s2321_s21 }
 0x43e   : > { %1392 = vmax.xlane.f32.xlu1 %v1391_v30 }
 0x442   : > { %1389 = vmax.xlane.f32.xlu0 %v1388_v31 }
 0x48e   : > { %v1384_v33 = vpop.xlane.xlu1 %1383 }
 0x48f   : > { %v1394_v34 = vsub.f32 %v1238_v8, %v1384_v33 }
 0x491   : > { %v1398_v28 = vmul.f32 1.442695, %v1394_v34 }
 0x492   : > { %v1046_v35 = vpop.permute.xlu1 %1045 }
 0x493   : > { %2553 = vpow2.f32 %v1398_v28  ;;  %v1053_v29 = vcombine.low %v1042_v32, %v1046_v35  ;;  %v1054_v38 = vcombine.high %v1042_v32, %v1046_v35 }
 0x495   : > { %v1061_v44 = vrot.slane %v1053_v29, %v2936_v40  ;;  %v1068_v45 = vrot.slane %v1054_v38, %v2936_v40 }
 0x496   : > { %v1387_v36 = vpop.xlane.xlu0 %1386  ;;  %v1048_v27 = vpop.permute.xlu1 %1047 }
 0x497   : > { %v1395_v37 = vsub.f32 %v1284_v18, %v1387_v36 }
 0x499   : > { %v1400_v39 = vmul.f32 1.442695, %v1395_v37 }
 0x49a   : > { %v1044_v41 = vpop.permute.xlu0 %1043 }
 0x49b   : > { %2555 = vpow2.f32 %v1400_v39  ;;  %v1069_v42 = vcombine.low %v1044_v41, %v1048_v27  ;;  %v1070_v43 = vcombine.high %v1044_v41, %v1048_v27 }
 0x49d   : > { %v1077_v46 = vrot.slane %v1069_v42, %v2936_v40  ;;  %v1084_v47 = vrot.slane %v1070_v43, %v2936_v40 }
 0x49f   : > { %v1085_v48 = vcombine.low %v1061_v44, %v1077_v46  ;;  %v1086_v49 = vcombine.high %v1061_v44, %v1077_v46  ;;  %v1101_v51 = vcombine.low %v1068_v45, %v1084_v47  ;;  %v1102_v52 = vcombine.high %v1068_v45, %v1084_v47 }
 0x4a0   : > { %v2554_v53 = vpop.eup %2553 }
 0x4a1   : > { %v1093_v54 = vrot.slane %v1085_v48, %v2946_v50  ;;  %v1100_v55 = vrot.slane %v1086_v49, %v2946_v50  ;;  %v1109_v56 = vrot.slane %v1101_v51, %v2946_v50  ;;  %v1116_v57 = vrot.slane %v1102_v52, %v2946_v50 }
 0x4a2   : > { %v1406_v58 = vsel %vm1197_vm3, %v2554_v53, 0.0  ;;  %v1418_v30 = vpack.c.bf16 %v2554_v53, %v2554_v53 }
 0x4a3   : > { %v1121_v59 = vcombine.low %v1093_v54, %v1100_v55  ;;  %v2289_v60 = vcombine.high %v1093_v54, %v1100_v55  ;;  %v1137_v61 = vcombine.low %v1109_v56, %v1116_v57  ;;  %v2290_v62 = vcombine.high %v1109_v56, %v1116_v57  ;;  %1407 = vadd.xlane.f32.xlu0 %v1406_v58 }
 0x4a5   : > { %v1128_v63 = vrot.slane %v1121_v59, %v2936_v40  ;;  %v1136_v0 = vrot.slane %v2289_v60, %v2936_v40  ;;  %v1144_v2 = vrot.slane %v1137_v61, %v2936_v40  ;;  %v1152_v3 = vrot.slane %v2290_v62, %v2936_v40 }
 0x4a7   : > { %v1153_v4 = vcombine.low %v1128_v63, %v1136_v0  ;;  %v1169_v5 = vcombine.low %v1144_v2, %v1152_v3  ;;  %v1154_v6 = vcombine.high %v1128_v63, %v1136_v0  ;;  %v1170_v7 = vcombine.high %v1144_v2, %v1152_v3 }
 0x4a8   : > { %v2556_v8 = vpop.eup %2555 }
 0x4a9   : > { %v1409_v11 = vsel %vm1197_vm3, %v2556_v8, 0.0  ;;  %v1161_v12 = vrot.slane %v1153_v4, %v2946_v50  ;;  %v1177_v13 = vrot.slane %v1169_v5, %v2946_v50  ;;  %v1168_v14 = vrot.slane %v1154_v6, %v2946_v50 }
 0x4aa   : > { %1410 = vadd.xlane.f32.xlu0 %v1409_v11  ;;  %v1184_v15 = vrot.slane %v1170_v7, %v2946_v50  ;;  %v1419_v31 = vpack.c.bf16 %v2556_v8, %v2556_v8 }
 0x4ab   : > { %v1185_v16 = vcombine.low %v1161_v12, %v1177_v13  ;;  %v1186_v17 = vcombine.high %v1161_v12, %v1177_v13 }
 0x4ac   : > { %v1187_v18 = vcombine.low %v1168_v14, %v1184_v15  ;;  %v1188_v19 = vcombine.high %v1168_v14, %v1184_v15 }
 0x4ad   : > { %v1422_v20 = vpack.c.bf16 %v1185_v16, %v1185_v16  ;;  %v1423_v21 = vpack.c.bf16 %v1186_v17, %v1186_v17 }
 0x4ae   : > { %v1424_v25 = vpack.c.bf16 %v1187_v18, %v1187_v18  ;;  %v1425_v26 = vpack.c.bf16 %v1188_v19, %v1188_v19 }
 0x4af   : > { %v1431_v22 = vsel %vm1429_vm4, %v1422_v20, 0  ;;  %v1477_v24 = vsel %vm1429_vm4, %v1423_v21, 0 }
 0x4b0   : > { %2395 = vmatpush3.bf16.msra.mxu1 %v1431_v22  ;;  %2401 = vmatpush3.bf16.msra.mxu0 %v1477_v24  ;;  %v1523_v32 = vsel %vm1429_vm4, %v1424_v25, 0  ;;  %v1569_v33 = vsel %vm1429_vm4, %v1425_v26, 0  ;;  %v2539_v22 = vld [vmem:[%s2852_s23 + $0x8] sm:$0xff]  }
 0x4b1   : > { %2406 = vmatprep.subr.bf16.mxu1 %v2667_v9  ;;  %2412 = vmatprep.subr.bf16.mxu0 %v2667_v9 }
 0x4b3   : > { %2397 = vmatmul.mubr.msk.bf16.vlgmr.msra.gmra.mxu1 %vm1197_vm3, %v1418_v30  ;;  %2403 = vmatmul.mubr.msk.bf16.vlgmr.msra.gmra.mxu0 %vm1197_vm3, %v1419_v31 }
 0x4b4   : > { %2407 = vmatpush3.bf16.msra.mxu1 %v1523_v32  ;;  %2413 = vmatpush3.bf16.msra.mxu0 %v1569_v33 }
 0x4b5   : > { %2414 = vmatprep.mubr.msk.bf16.mxu0 %vm2668_vm2, %v2667_v9  ;;  %2408 = vmatprep.mubr.msk.bf16.mxu1 %vm2668_vm2, %v2667_v9 }
 0x4b6   : > { %2418 = vmatprep.subr.bf16.mxu1 %v2667_v9  ;;  %2426 = vmatprep.subr.bf16.mxu0 %v2667_v9 }
 0x4c7   : > { %v1393_v34 = vpop.xlane.xlu1 %1392 }
 0x4c8   : > { %v1397_v28 = vsub.f32 %v3000_v23, %v1393_v34 }
 0x4ca   : > { %v1404_v35 = vmul.f32 1.442695, %v1397_v28  ;;  %v2540_v28 = vld [vmem:[%s2852_s23] sm:$0xff]   ;;  %s2676_s23 = smov 16  }
 0x4cb   : > { %v1390_v36 = vpop.xlane.xlu0 %1389 }
 0x4cc   : > { %2557 = vpow2.f32 %v1404_v35  ;;  %v1396_v37 = vsub.f32 %v2996_v10, %v1390_v36 }
 0x4ce   : > { %v1402_v29 = vmul.f32 1.442695, %v1396_v37 }
 0x4d0   : > { %2559 = vpow2.f32 %v1402_v29 }
 0x4d9   : > { %v2558_v38 = vpop.eup %2557 }
 0x4da   : > { %v1415_v39 = vsel %vm1197_vm3, %v2558_v38, 0.0  ;;  %v1421_v27 = vpack.c.bf16 %v2558_v38, %v2558_v38 }
 0x4db   : > { %1416 = vadd.xlane.f32.xlu0 %v1415_v39 }
 0x4dc   : > { %2415 = vmatmul.mubr.msk.bf16.vlgmr.msra.gmra.mxu0 %vm1197_vm3, %v1421_v27 }
 0x4dd   : > { %v2560_v41 = vpop.eup %2559  ;;  %2430 = vmatprep.mubr.msk.bf16.mxu0 %vm2668_vm2, %v2667_v9 }
 0x4de   : > { %v1412_v23 = vsel %vm1197_vm3, %v2560_v41, 0.0  ;;  %v1420_v42 = vpack.c.bf16 %v2560_v41, %v2560_v41 }
 0x4df   : > { %1413 = vadd.xlane.f32.xlu1 %v1412_v23 }
 0x4e0   : > { %2409 = vmatmul.mubr.msk.bf16.vlgmr.msra.gmra.mxu1 %vm1197_vm3, %v1420_v42 }
 0x4e1   : > { %2422 = vmatprep.mubr.msk.bf16.mxu1 %vm2668_vm2, %v2667_v9  ;;  %2419 = vmatpush3.bf16.msra.mxu1 %v2539_v22  ;;  %v2548_v22 = vld [vmem:[%s2883_s7 + $0x10] sm:$0xff]  }
 0x4e2   : > { %2420 = vmatprep.subr.bf16.mxu1 %v2667_v9 }
 0x4e5   : > { %2421 = vmatpush3.bf16.msra.mxu1 %v2540_v28 }
 0x4e6   : > { %2434 = vmatprep.subr.bf16.mxu1 %v2667_v9 }
 0x52c   : > { %v1408_v51 = vpop.xlane.xlu0 %1407 }
 0x533   : > { %v1411_v52 = vpop.xlane.xlu0 %1410 }
 0x564   : > { %v1417_v53 = vpop.xlane.xlu0 %1416 }
 0x565   : > { %2561 = vrcp.f32 %v1417_v53 }
 0x566   : > { %2563 = vrcp.f32 %v1411_v52 }
 0x567   : > { %2565 = vrcp.f32 %v1408_v51 }
 0x568   : > { %v1414_v54 = vpop.xlane.xlu1 %1413 }
 0x569   : > { %2567 = vrcp.f32 %v1414_v54  ;;  %v2301_v54 = vld [vmem:[%s3250_s27] ss:$0 sm:$0xff] }
 0x572   : > { %v2562_v55 = vpop.eup %2561 }
 0x573   : > { %v1467_v10 = vpop.f32.mrf.mxu1  ;;  %v1513_v43 = vpop.f32.mrf.mxu0 }
 0x574   : > { %v2564_v58 = vpop.eup %2563 }
 0x575   : > { %v2398_v44 = vpop.f32.mrf.mxu1  ;;  %v2404_v45 = vpop.f32.mrf.mxu0  ;;  %v1616_v61 = vmul.f32 %v2564_v58, %v1513_v43 }
 0x576   : > { %v2566_v60 = vpop.eup %2565 }
 0x577   : > { %v1470_v46 = vpop.f32.mrf.mxu1  ;;  %v1516_v47 = vpop.f32.mrf.mxu0  ;;  %v1615_v2 = vmul.f32 %v2566_v60, %v1467_v10 }
 0x578   : > { %v2568_v62 = vpop.eup %2567 }
 0x579   : > { %v2399_v48 = vpop.f32.mrf.mxu1  ;;  %v2405_v49 = vpop.f32.mrf.mxu0 }
 0x59c   : > { %v1605_v56 = vpop.f32.mrf.mxu0 }
 0x59d   : > { %v1618_v57 = vmul.f32 %v2562_v55, %v1605_v56 }
 0x59e   : > { %v2416_v59 = vpop.f32.mrf.mxu0 }
 0x59f   : > { %v1635_v3 = vcombine.low %v1616_v61, %v1618_v57  ;;  %v1636_v4 = vcombine.high %v1616_v61, %v1618_v57 }
 0x5a0   : > { %v1559_v63 = vpop.f32.mrf.mxu1  ;;  %v1608_v0 = vpop.f32.mrf.mxu0 }
 0x5a1   : > { %v1617_v5 = vmul.f32 %v2568_v62, %v1559_v63  ;;  %v1643_v13 = vrot.slane %v1635_v3, %v2936_v40  ;;  %v1650_v14 = vrot.slane %v1636_v4, %v2936_v40  ;;  %v2541_v4 = vld [vmem:[%s2869_s18 + $0x8] sm:$0xff]  }
 0x5a2   : > { %v2410_v6 = vpop.f32.mrf.mxu1  ;;  %v2417_v7 = vpop.f32.mrf.mxu0  ;;  %2427 = vmatpush3.bf16.msra.mxu0 %v2541_v4 }
 0x5a3   : > { %v1619_v8 = vcombine.low %v1615_v2, %v1617_v5  ;;  %v1620_v11 = vcombine.high %v1615_v2, %v1617_v5  ;;  %2428 = vmatprep.subr.bf16.mxu0 %v2667_v9 }
 0x5a4   : > { %v1562_v12 = vpop.f32.mrf.mxu1 }
 0x5a5   : > { %v1627_v15 = vrot.slane %v1619_v8, %v2936_v40  ;;  %v1634_v16 = vrot.slane %v1620_v11, %v2936_v40  ;;  %v2305_v11 = vld [vmem:[%s3252_s28] ss:$0 sm:$0xff] }
 0x5a6   : > { %v2411_v17 = vpop.f32.mrf.mxu1 }
 0x5a7   : > { %v1651_v18 = vcombine.low %v1627_v15, %v1643_v13  ;;  %v1652_v19 = vcombine.high %v1627_v15, %v1643_v13  ;;  %v1667_v20 = vcombine.low %v1634_v16, %v1650_v14  ;;  %v1668_v21 = vcombine.high %v1634_v16, %v1650_v14  ;;  %v2306_v13 = vld [vmem:[%s623_s0] ss:$0 sm:$0xff]  ;;  %v2543_v17 = vld [vmem:[%s2883_s7 + $0x38] sm:$0xff]  }
 0x5a9   : > { %v1659_v24 = vrot.slane %v1651_v18, %v2946_v50  ;;  %v1666_v25 = vrot.slane %v1652_v19, %v2946_v50  ;;  %v1675_v26 = vrot.slane %v1667_v20, %v2946_v50  ;;  %v1682_v30 = vrot.slane %v1668_v21, %v2946_v50  ;;  %v2544_v18 = vld [vmem:[%s2883_s7 + $0x30] sm:$0xff]   ;;  %v2545_v19 = vld [vmem:[%s2883_s7 + $0x28] sm:$0xff]   ;;  %v2546_v20 = vld [vmem:[%s2883_s7 + $0x20] sm:$0xff]  }
 0x5aa   : > { %v2547_v21 = vld [vmem:[%s2883_s7 + $0x18] sm:$0xff]  }
 0x5ab   : > { %v1687_v31 = vcombine.low %v1659_v24, %v1666_v25  ;;  %v2299_v32 = vcombine.high %v1659_v24, %v1666_v25  ;;  %v1703_v33 = vcombine.low %v1675_v26, %v1682_v30  ;;  %v2300_v34 = vcombine.high %v1675_v26, %v1682_v30  ;;  %v2549_v24 = vld [vmem:[%s2883_s7 + $0x8] sm:$0xff]   ;;  %v2550_v25 = vld [vmem:[%s2883_s7] sm:$0xff]   ;;  %s3254_s7 = sld [smem:[#allocation6_spill]] }
 0x5ac   : > { %v2307_v26 = vld [vmem:[%s631_s11] ss:$0 sm:$0xff] }
 0x5ad   : > { %v1694_v35 = vrot.slane %v1687_v31, %v2936_v40  ;;  %v1702_v36 = vrot.slane %v2299_v32, %v2936_v40  ;;  %v1710_v37 = vrot.slane %v1703_v33, %v2936_v40  ;;  %v1718_v29 = vrot.slane %v2300_v34, %v2936_v40 }
 0x5af   : > { %v1720_v38 = vcombine.high %v1694_v35, %v1702_v36  ;;  %v1736_v39 = vcombine.high %v1710_v37, %v1718_v29  ;;  %v1719_v27 = vcombine.low %v1694_v35, %v1702_v36  ;;  %v1735_v41 = vcombine.low %v1710_v37, %v1718_v29 }
 0x5b1   : > { %v1734_v23 = vrot.slane %v1720_v38, %v2946_v50  ;;  %v1750_v42 = vrot.slane %v1736_v39, %v2946_v50  ;;  %v1727_v10 = vrot.slane %v1719_v27, %v2946_v50  ;;  %v1743_v43 = vrot.slane %v1735_v41, %v2946_v50  ;;  %s3257_s30 = sand.u32 1, %s3254_s7  }
 0x5b3   : > { %v1753_v44 = vcombine.low %v1734_v23, %v1750_v42  ;;  %v1752_v45 = vcombine.high %v1727_v10, %v1743_v43  ;;  %v1751_v46 = vcombine.low %v1727_v10, %v1743_v43  ;;  %v1754_v40 = vcombine.high %v1734_v23, %v1750_v42  ;;  %v2311_v23 = vld [vmem:[%s639_s25] ss:$0 sm:$0xff]  ;;  %s2060_s25 = scalar_lea.sflag [#allocation3], %s3257_s30 }
 0x5b5   : > { %1760 = vrot.lane.b32.xlu0 %v1753_v44, %s2676_s23  ;;  %1756 = vrot.lane.b32.xlu1 %v1752_v45, %s2677_s20  ;;  %s2073_s23 = sshll.u32 %s2885_s26, 4  ;;  %s3137_s23 = int_to_ptr.vmem [resolvable:$true] %s2073_s23 }
 0x5b6   : > { %s2573_s27 = scalar_lea.vmem %s3137_s23, 128  ;;  %p2580_p5 = scmp.lt.s32.totalorder %s3137_s23, %s2578_s14 }
 0x5b7   : > { %p2574_p1 = scmp.ne.s32.totalorder %s3137_s23, %s2573_s27  ;;  %p2581_p6 = scmp.lt.s32.totalorder %s2579_s17, %s2573_s27 }
 0x5b9   : > { %1764 = vrot.lane.b32.xlu1 %v1754_v40, %s2678_s3  ;;  %p2575_p2 = pnand %p2574_p1, %p2799_p3  ;;  %p2582_p7 = por %p2581_p6, %p2580_p5 }
 0x5bb   : > { %p2576_p4 = pneg %p2575_p2 }
 0x5bd   : > { %p2583_p8 = pnand %p2582_p7, %p2576_p4 }
 0x627   : > { %v1757_v47 = vpop.permute.xlu1 %1756  ;;  %v1761_v48 = vpop.permute.xlu0 %1760 }
 0x628   : > { %v1767_v49 = vsel %vm1197_vm3, %v1751_v46, %v1757_v47 }
 0x629   : > { %v1769_v52 = vsel %vm1768_vm5, %v1767_v49, %v1761_v48 }
 0x62b   : > { %v1765_v51 = vpop.permute.xlu1 %1764 }
 0x62c   : > { %v1771_v50 = vsel %vm1770_vm6, %v1769_v52, %v1765_v51 }
 0x62d   : > { %v1772_v53 = vpack.c.bf16 %v1771_v50, %v1771_v50 }
 0x62f   : > { %2423 = vmatmul.mubr.msk.bf16.vlgmr.msra.gmra.mxu1 %vm651_vm1, %v1772_v53 }
 0x630   : > { %2450 = vmatprep.mubr.msk.bf16.mxu1 %vm2668_vm2, %v2667_v9  ;;  %2435 = vmatpush3.bf16.msra.mxu1 %v2543_v17 }
 0x631   : > { %2436 = vmatprep.subr.bf16.mxu1 %v2667_v9 }
 0x634   : > { %2437 = vmatpush3.bf16.msra.mxu1 %v2544_v18 }
 0x635   : > { %2438 = vmatprep.subr.bf16.mxu1 %v2667_v9 }
 0x638   : > { %2439 = vmatpush3.bf16.msra.mxu1 %v2545_v19 }
 0x639   : > { %2440 = vmatprep.subr.bf16.mxu1 %v2667_v9 }
 0x63c   : > { %2441 = vmatpush3.bf16.msra.mxu1 %v2546_v20 }
 0x63d   : > { %2442 = vmatprep.subr.bf16.mxu1 %v2667_v9 }
 0x640   : > { %2443 = vmatpush3.bf16.msra.mxu1 %v2547_v21 }
 0x641   : > { %2444 = vmatprep.subr.bf16.mxu1 %v2667_v9 }
 0x644   : > { %2445 = vmatpush3.bf16.msra.mxu1 %v2548_v22 }
 0x645   : > { %2446 = vmatprep.subr.bf16.mxu1 %v2667_v9 }
 0x648   : > { %2447 = vmatpush3.bf16.msra.mxu1 %v2549_v24 }
 0x649   : > { %2448 = vmatprep.subr.bf16.mxu1 %v2667_v9 }
 0x64c   : > { %2449 = vmatpush3.bf16.msra.mxu1 %v2550_v25 }
 0x6ef   : > { %v1833_v55 = vpop.f32.mrf.mxu1 }
 0x6f0   : > { %v1834_v56 = vadd.f32 %v2301_v54, %v1833_v55 }
 0x6f1   : > { %v2424_v57 = vpop.f32.mrf.mxu1 }
 0x6f2   : > { %v3084_v58 = vadd.f32 %v1834_v56, %v2890_v1  ;;  %v2542_v1 = vld [vmem:[%s2869_s18] sm:$0xff]  }
 0x6f3   : > { %v1836_v59 = vpop.f32.mrf.mxu1  ;;  %2429 = vmatpush3.bf16.msra.mxu0 %v2542_v1 }
 0x6f4   : > { %v1842_v60 = vsel %vm651_vm1, %v3084_v58, 0.0 }
 0x6f5   : > { %1843 = vadd.xlane.f32.xlu1 %v1842_v60  ;;  %v2425_v61 = vpop.f32.mrf.mxu1 }
 0x77e   : > { %v1844_v62 = vpop.xlane.xlu1 %1843 }
 0x77f   : > { %v1845_v63 = vmul.f32 0.03125, %v1844_v62 }
 0x781   : > { %v1846_v0 = vsub.f32 %v3084_v58, %v1845_v63 }
 0x783   : > { %v1847_v2 = vmul.f32 %v1846_v0, %v1846_v0 }
 0x785   : > { %v1848_v3 = vsel %vm651_vm1, %v1847_v2, 0.0 }
 0x786   : > { %1849 = vadd.xlane.f32.xlu0 %v1848_v3 }
 0x80f   : > { %v1850_v5 = vpop.xlane.xlu0 %1849 }
 0x810   : > { %v1851_v6 = vmul.f32 0.03125, %v1850_v5 }
 0x812   : > { %v1852_v7 = vadd.f32 1e-05, %v1851_v6 }
 0x814   : > { %2569 = vrsqrt.f32 %v1852_v7 }
 0x821   : > { %v2570_v8 = vpop.eup %2569 }
 0x822   : > { %v1854_v12 = vmul.f32 %v2570_v8, %v1846_v0 }
 0x824   : > { %v1861_v14 = vmul.f32 %v2305_v11, %v1854_v12 }
 0x826   : > { %v1868_v15 = vadd.f32 %v2306_v13, %v1861_v14 }
 0x828   : > { %v1869_v16 = vpack.c.bf16 %v1868_v15, %v1868_v15 }
 0x82a   : > { %2431 = vmatmul.mubr.msk.bf16.vlgmr.msra.gmra.mxu0 %vm651_vm1, %v1869_v16 }
 0x8ea   : > { %v1930_v30 = vpop.f32.mrf.mxu0 }
 0x8eb   : > { %v1931_v31 = vadd.f32 %v2307_v26, %v1930_v30 }
 0x8ec   : > { %v2432_v32 = vpop.f32.mrf.mxu0 }
 0x8ed   : > { %v1937_v33 = vmul.f32 0.044715, %v1931_v31  ;;  %v1936_v38 = vmul.f32 0.5, %v1931_v31 }
 0x8ee   : > { %v1933_v34 = vpop.f32.mrf.mxu0 }
 0x8ef   : > { %v1938_v28 = vmul.f32 %v1937_v33, %v1931_v31 }
 0x8f0   : > { %v2433_v35 = vpop.f32.mrf.mxu0 }
 0x8f1   : > { %v1939_v36 = vmul.f32 %v1938_v28, %v1931_v31 }
 0x8f3   : > { %v1940_v37 = vadd.f32 %v1939_v36, %v1931_v31 }
 0x8f5   : > { %v1941_v29 = vmul.f32 0.7978846, %v1940_v37 }
 0x8f7   : > { %2571 = vtanh.f32 %v1941_v29 }
 0x904   : > { %v2572_v9 = vpop.eup %2571 }
 0x905   : > { %v1943_v39 = vadd.f32 1.0, %v2572_v9 }
 0x907   : > { %v1944_v27 = vmul.f32 %v1943_v39, %v1936_v38 }
 0x909   : > { %v1945_v41 = vpack.c.bf16 %v1944_v27, %v1944_v27 }
 0x90b   : > { %2451 = vmatmul.mubr.bf16.vlgmr.msra.gmra.mxu1 %v1945_v41 }
 0x9cb   : > { %v2051_v42 = vpop.f32.mrf.mxu1 }
 0x9cc   : > { %v2052_v10 = vadd.f32 %v2311_v23, %v2051_v42 }
 0x9cd   : > { %v2452_v43 = vpop.f32.mrf.mxu1 }
 0x9ce   : > { %v2057_v44 = vadd.f32 %v2052_v10, %v3084_v58 }
 0x9cf   : > { %v2054_v45 = vpop.f32.mrf.mxu1 }
 0x9d0   : > { %2058 = vst.msk [vmem:[%s2885_s26] sm:$0xff] %vm651_vm1, %v2057_v44 }
 0x9d1   : > { %v2453_v46 = vpop.f32.mrf.mxu1 }
 0x9d2   : > { %2586 = shalt.err (!%p2583_p8)
}
 0x9d3   : > { %s2587_s26 = scalar_lea.hbm %s3135_s13, 128  ;;  %s2591_s22 = scalar_lea.hbm %s3256_s5, 256 }
 0x9d4   : > { %p2588_p10 = scmp.ne.s32.totalorder %s3135_s13, %s2587_s26  ;;  %p2592_p13 = scmp.lt.s32.totalorder %s3135_s13, %s3256_s5 }
 0x9d5   : > { %p2593_p0 = scmp.lt.s32.totalorder %s2591_s22, %s2587_s26 }
 0x9d6   : > { %p2589_p11 = pnand %p2588_p10, %p2799_p3 }
 0x9d7   : > { %p2594_p1 = por %p2593_p0, %p2592_p13 }
 0x9d8   : > { %p2590_p12 = pneg %p2589_p11 }
 0x9da   : > { %p2595_p2 = pnand %p2594_p1, %p2590_p12 }
 0x9dc   : > { %2598 = shalt.err (!%p2595_p2)
}
 0x9dd   : > { %2454 = dma.vmem_to_hbm [thread:$0]  (%p2799_p3), %s3137_s23, 128, %s3135_s13, %s2060_s25  }
 0x9de PF: > { %s3258_s24 = sld [smem:[#allocation12_spill]] }
 0x9df   : > { %s3259_s7 = sld [smem:[#allocation5_spill]] }
 0x9e4   : > { %p2460_p4 = scmp.ge.s32.totalorder %s3258_s24, 2 }
 0x9e5   : > { %s2085_s16 = sand.u32 1, %s3259_s7  }
 0x9e6   : > { %p2457_p5 = pnand %p2460_p4, %p2809_p9  ;;  %s2086_s21 = scalar_lea.sflag [#allocation3], %s2085_s16 }
 0x9e8   : > { %p2458_p6 = pneg %p2457_p5 }
 0x9ea   : > { %2632 = dma.done.wait (%p2458_p6), %s2086_s21, 128  }
 0x9eb   : > { %2634 = vsyncadd (%p2458_p6), %s2086_s21, 4294967168  ;;  %s26_s15 = sadd.s32 1, %s3258_s24   ;;  %s3261_s25 = sld [smem:[#allocation6_spill]] }
 0x9ec   : > { %p23_p7 = scmp.ge.s32.totalorder %s26_s15, 6   ;;  %s3262_s26 = sld [smem:[#allocation7_spill]] }
 0x9ed   : > { %s3263_s27 = sld [smem:[#allocation17_spill]] }
 0x9ee   : > { %s3264_s28 = sld [smem:[#allocation10_spill]]  ;;  %25 = sbr.rel (!%p23_p7) target bundleno = 12 (0xc), region = 147 }
 0x9ef   : > { %s3265_s29 = sld [smem:[#allocation11_spill]] }
 0x9f0   : > { %s3266_s30 = sld [smem:[#allocation13_spill]] }
 0x9f1   : > { %s3267_s14 = sld [smem:[#allocation15_spill]] }
 0x9f3   :  { %2091 = vsyncpa [#allocation3], 1 }
 0x9f4   :  { %2093 = vsyncpa [#allocation3 + $0x1], 1 }

</bundles_post_ra>
